<compile_context>
chip_gen: v7x
topology: tpu7x:2x2x1
jax: 0.10.0
libtpu: 0.0.40
codegen_flags: <defaults>
</compile_context>

<pallas_src>
import math

import jax
import jax.numpy as jnp
from jax.experimental import pallas as pl
from jax.experimental.pallas import tpu as pltpu


_LANE = 1024            # lane-dense width for the elementwise (equal-dims) path
_EQ_TILE_ROWS = 256     # 256 x 1024 x 4B = 1 MiB per array per tile
_BCAST_TILE_BYTES = 2 * 1024 * 1024
_VMEM_LIMIT = 32 * 1024 * 1024   # covers 4 arrays x 2 pipeline buffers on all gens


def _cdiv(a, b):
    return -(-a // b)


def _round_up(x, m):
    return _cdiv(x, m) * m


# -----------------------------------------------------------------------------
# Equal-dims path: purely elementwise, computed on a flat (rows, 1024) layout.
# -----------------------------------------------------------------------------
def _cm_eq_kernel(p_ref, a_ref, real_ref, imag_ref):
    p = p_ref[...]
    a = a_ref[...]
    real_ref[...] = jnp.cos(p) * a
    imag_ref[...] = jnp.sin(p) * a


def _complex_multiply_equal(phase, amplitude):
    orig_shape = phase.shape
    total = int(phase.size)

    m = _cdiv(total, _LANE)
    tr = min(_EQ_TILE_ROWS, m)       # full extent if small, else 256 (multiple of 8)
    m_pad = _round_up(m, tr)
    total_pad = m_pad * _LANE

    p = phase.reshape(-1)
    a = amplitude.reshape(-1)
    if total_pad != total:
        p = jnp.pad(p, (0, total_pad - total))
        a = jnp.pad(a, (0, total_pad - total))
    p2 = p.reshape(m_pad, _LANE)
    a2 = a.reshape(m_pad, _LANE)

    spec = pl.BlockSpec((tr, _LANE), lambda i: (i, 0))
    real2, imag2 = pl.pallas_call(
        _cm_eq_kernel,
        out_shape=(jax.ShapeDtypeStruct((m_pad, _LANE), jnp.float32),
                   jax.ShapeDtypeStruct((m_pad, _LANE), jnp.float32)),
        grid_spec=pltpu.PrefetchScalarGridSpec(
            num_scalar_prefetch=0,
            grid=(m_pad // tr,),
            in_specs=[spec, spec],
            out_specs=[spec, spec],
        ),
        compiler_params=pltpu.CompilerParams(
            dimension_semantics=("parallel",),
            vmem_limit_bytes=_VMEM_LIMIT,
        ),
    )(p2, a2)

    real = real2.reshape(-1)[:total].reshape(orig_shape)
    imag = imag2.reshape(-1)[:total].reshape(orig_shape)
    return [real, imag]


# -----------------------------------------------------------------------------
# Broadcast path: phase (..., ) * amplitude (..., D).  G consecutive rows are
# packed into one lane-dense row of width G*D (multiple of 128 when possible).
# -----------------------------------------------------------------------------
def _make_cm_bcast_kernel(g, d):
    def kernel(p_ref, a_ref, real_ref, imag_ref):
        p = p_ref[...]                      # (TR, g)
        a = a_ref[...]                      # (TR, g*d)
        c = jnp.cos(p)
        s = jnp.sin(p)
        if g == 1:
            c_e = c                         # (TR, 1) lane-broadcasts against (TR, d)
            s_e = s
        else:
            # Expand phase j of each row-group to lanes [j*d, (j+1)*d) with a tiny
            # constant 0/1 matrix on the MXU (free vs. the HBM-store-bound path).
            rows = jax.lax.broadcasted_iota(jnp.int32, (g, g * d), 0)
            cols = jax.lax.broadcasted_iota(jnp.int32, (g, g * d), 1)
            lo = rows * d
            expand = jnp.logical_and(cols >= lo, cols < lo + d).astype(jnp.float32)
            c_e = jnp.dot(c, expand, preferred_element_type=jnp.float32)
            s_e = jnp.dot(s, expand, preferred_element_type=jnp.float32)
        real_ref[...] = c_e * a
        imag_ref[...] = s_e * a
    return kernel


def _complex_multiply_broadcast(phase, amplitude):
    lead_shape = tuple(phase.shape)
    d = int(amplitude.shape[-1])
    n = int(phase.size)

    # Choose the row-group size g so g*d is a multiple of 128 lanes.
    if d % 128 == 0:
        g = 1
    else:
        g = 128 // math.gcd(d, 128)
        if g > 16:            # awkward D; fall back to full-D blocks (masked stores)
            g = 1
    width = g * d

    tr_max = max(8, min(2048, (_BCAST_TILE_BYTES // (width * 4)) // 8 * 8))
    m = _cdiv(n, g)
    tr = min(tr_max, m)
    m_pad = _round_up(m, tr) if tr < m else m
    n_pad = m_pad * g

    p = phase.reshape(-1)
    a = amplitude.reshape(-1, d)
    if n_pad != n:
        p = jnp.pad(p, (0, n_pad - n))
        a = jnp.pad(a, ((0, n_pad - n), (0, 0)))
    p2 = p.reshape(m_pad, g)
    a2 = a.reshape(m_pad, width)

    wide_spec = pl.BlockSpec((tr, width), lambda i: (i, 0))
    phase_spec = pl.BlockSpec((tr, g), lambda i: (i, 0))
    real2, imag2 = pl.pallas_call(
        _make_cm_bcast_kernel(g, d),
        out_shape=(jax.ShapeDtypeStruct((m_pad, width), jnp.float32),
                   jax.ShapeDtypeStruct((m_pad, width), jnp.float32)),
        grid_spec=pltpu.PrefetchScalarGridSpec(
            num_scalar_prefetch=0,
            grid=(m_pad // tr,),
            in_specs=[phase_spec, wide_spec],
            out_specs=[wide_spec, wide_spec],
        ),
        compiler_params=pltpu.CompilerParams(
            dimension_semantics=("parallel",),
            vmem_limit_bytes=_VMEM_LIMIT,
        ),
    )(p2, a2)

    out_shape = lead_shape + (d,)
    real = real2.reshape(-1, d)[:n].reshape(out_shape)
    imag = imag2.reshape(-1, d)[:n].reshape(out_shape)
    return [real, imag]


# -----------------------------------------------------------------------------
# Public wrapper mirroring ComplexMultiply.forward
# -----------------------------------------------------------------------------
def complex_multiply(inputs):
    if not isinstance(inputs, list):
        raise ValueError('This layer should be called on a list of 2 inputs.')
    if len(inputs) != 2:
        raise ValueError('This layer should be called on a list of 2 inputs.Got '
                         + str(len(inputs)) + ' inputs.')
    phase = jnp.asarray(inputs[0], dtype=jnp.float32)
    amplitude = jnp.asarray(inputs[1], dtype=jnp.float32)
    if amplitude.ndim == phase.ndim + 1:
        return _complex_multiply_broadcast(phase, amplitude)
    elif amplitude.ndim == phase.ndim:
        if phase.shape != amplitude.shape:
            phase, amplitude = jnp.broadcast_arrays(phase, amplitude)
        return _complex_multiply_equal(phase, amplitude)
    else:
        raise ValueError('input dimensions of phase and amplitude do not agree '
                         'to each other.')


if __name__ == "__main__":
    key = jax.random.PRNGKey(0)
    k1, k2, k3 = jax.random.split(key, 3)

    B, S, D = 2, 8, 32

    # Case 1: phase and amplitude share the same shape (B, S, D).
    phase_eq = jax.random.uniform(k1, (B, S, D), dtype=jnp.float32,
                                  minval=-3.0, maxval=3.0)
    amp = jax.random.normal(k2, (B, S, D), dtype=jnp.float32)
    real_eq, imag_eq = complex_multiply([phase_eq, amp])
    jax.block_until_ready(real_eq)
    jax.block_until_ready(imag_eq)
    ref_real_eq = jnp.cos(phase_eq) * amp
    ref_imag_eq = jnp.sin(phase_eq) * amp
    assert real_eq.shape == (B, S, D) and imag_eq.shape == (B, S, D)
    assert jnp.allclose(real_eq, ref_real_eq, atol=2e-5, rtol=1e-4)
    assert jnp.allclose(imag_eq, ref_imag_eq, atol=2e-5, rtol=1e-4)

    # Case 2: per-token phase (B, S) broadcast over the embedding dim of (B, S, D).
    phase_bc = jax.random.uniform(k3, (B, S), dtype=jnp.float32,
                                  minval=-3.0, maxval=3.0)
    real_bc, imag_bc = complex_multiply([phase_bc, amp])
    jax.block_until_ready(real_bc)
    jax.block_until_ready(imag_bc)
    ref_real_bc = jnp.cos(phase_bc)[..., None] * amp
    ref_imag_bc = jnp.sin(phase_bc)[..., None] * amp
    assert real_bc.shape == (B, S, D) and imag_bc.shape == (B, S, D)
    assert jnp.allclose(real_bc, ref_real_bc, atol=2e-5, rtol=1e-4)
    assert jnp.allclose(imag_bc, ref_imag_bc, atol=2e-5, rtol=1e-4)

    print("KERNEL_OK")
</pallas_src>

<mosaic_0001>
module attributes {stable_mosaic.version = 11 : i64} {
  func.func @_cm_eq_kernel(%arg0: i32, %arg1: memref<1x1024xf32, #tpu.memory_space<vmem>>, %arg2: memref<1x1024xf32, #tpu.memory_space<vmem>>, %arg3: memref<1x1024xf32, #tpu.memory_space<vmem>>, %arg4: memref<1x1024xf32, #tpu.memory_space<vmem>>) attributes {dimension_semantics = [#tpu.dimension_semantics<parallel>], iteration_bounds = array<i64: 1>, scalar_prefetch = 0 : i64, scratch_operands = 0 : i64, tpu.core_type = #tpu.core_type<tc>, window_params = [{transform_indices = @transform_0, window_bounds = array<i64: 1, 1024>}, {transform_indices = @transform_1, window_bounds = array<i64: 1, 1024>}, {transform_indices = @transform_2, window_bounds = array<i64: 1, 1024>}, {transform_indices = @transform_3, window_bounds = array<i64: 1, 1024>}]} {
    %c0 = arith.constant 0 : index
    %c0_0 = arith.constant 0 : index
    %0 = vector.load %arg1[%c0, %c0_0] : memref<1x1024xf32, #tpu.memory_space<vmem>>, vector<1x1024xf32>
    %c0_1 = arith.constant 0 : index
    %c0_2 = arith.constant 0 : index
    %1 = vector.load %arg2[%c0_1, %c0_2] : memref<1x1024xf32, #tpu.memory_space<vmem>>, vector<1x1024xf32>
    %2 = math.cos %0 : vector<1x1024xf32>
    %3 = arith.mulf %2, %1 : vector<1x1024xf32>
    %c0_3 = arith.constant 0 : index
    %c0_4 = arith.constant 0 : index
    %4 = vector.load %arg3[%c0_3, %c0_4] : memref<1x1024xf32, #tpu.memory_space<vmem>>, vector<1x1024xf32>
    tpu.vector_store %arg3[%c0_3, %c0_4], %3 {strides = array<i32>} : memref<1x1024xf32, #tpu.memory_space<vmem>>, vector<1x1024xf32>,
    %5 = math.sin %0 : vector<1x1024xf32>
    %6 = arith.mulf %5, %1 : vector<1x1024xf32>
    %c0_5 = arith.constant 0 : index
    %c0_6 = arith.constant 0 : index
    %7 = vector.load %arg4[%c0_5, %c0_6] : memref<1x1024xf32, #tpu.memory_space<vmem>>, vector<1x1024xf32>
    tpu.vector_store %arg4[%c0_5, %c0_6], %6 {strides = array<i32>} : memref<1x1024xf32, #tpu.memory_space<vmem>>, vector<1x1024xf32>,
    return
  }
  func.func @transform_0(%arg0: i32) -> (i32, i32) {
    %c0_i32 = arith.constant 0 : i32
    %c0_i32_0 = arith.constant 0 : i32
    return %arg0, %c0_i32 : i32, i32
  }
  func.func @transform_1(%arg0: i32) -> (i32, i32) {
    %c0_i32 = arith.constant 0 : i32
    %c0_i32_0 = arith.constant 0 : i32
    return %arg0, %c0_i32 : i32, i32
  }
  func.func @transform_2(%arg0: i32) -> (i32, i32) {
    %c0_i32 = arith.constant 0 : i32
    %c0_i32_0 = arith.constant 0 : i32
    return %arg0, %c0_i32 : i32, i32
  }
  func.func @transform_3(%arg0: i32) -> (i32, i32) {
    %c0_i32 = arith.constant 0 : i32
    %c0_i32_0 = arith.constant 0 : i32
    return %arg0, %c0_i32 : i32, i32
  }
}

</mosaic_0001>

<bundles_post_ra>
// kernel: tpu_custom_call.1
= control target key start
LH: loop header
LB: loop body
LE: loop exit
PB: predicated region body
PF: predicated region fallthrough
CT: control target
= control target key end

     0   :  { %9 = vsyncpa [#allocation3], 0  ;;  %s503_s0 = inlined_call_operand.hbm [shape: f32[1,1024], index: 0, kind: input, shape index: {}]   ;;  %s504_s1 = inlined_call_operand.hbm [shape: f32[1,1024], index: 1, kind: input, shape index: {}]   ;;  %s505_s2 = inlined_call_operand.hbm [shape: f32[1,1024], index: 2, kind: output, shape index: {0}]   ;;  %s506_s3 = inlined_call_operand.hbm [shape: f32[1,1024], index: 3, kind: output, shape index: {1}]  }
   0x1   :  { %10 = vsyncpa [#allocation6], 0 }
   0x2   :  { %11 = vsyncpa [#allocation4], 0 }
   0x3   :  { %12 = vsyncpa [#allocation9], 0  ;;  %s404_s12 = smov [#allocation2]   ;;  %s405_s14 = smov [#allocation5]  }
   0x4   :  { %s19_s13 = sshll.u32 %s404_s12, 4  ;;  %s29_s15 = sshll.u32 %s405_s14, 4  ;;  %s20_s13 = int_to_ptr.vmem [resolvable:$true] %s19_s13  ;;  %s30_s15 = int_to_ptr.vmem [resolvable:$true] %s29_s15 }
   0x5   :  { %s308_s18 = scalar_lea.hbm %s503_s0, 128 }
   0x6   :  { %p309_p0 = scmp.ne.s32.totalorder %s503_s0, %s308_s18  ;;  %p312_p1 = scmp.lt.u32.totalorder %s308_s18, %s503_s0 }
   0x8   :  { %p314_p2 = pnand %p312_p1, %p309_p0 }
   0xa   :  { %317 = shalt.err (!%p314_p2)
}
   0xb   :  { %s318_s23 = scalar_lea.vmem %s20_s13, 128  ;;  %p323_p4 = scmp.lt.s32.totalorder %s20_s13, %s20_s13 }
   0xc   :  { %p319_p3 = scmp.ne.s32.totalorder %s20_s13, %s318_s23  ;;  %p324_p5 = scmp.lt.s32.totalorder %s318_s23, %s318_s23 }
   0xe   :  { %p325_p6 = por %p324_p5, %p323_p4 }
  0x10   :  { %p326_p7 = pnand %p325_p6, %p319_p3 }
  0x12   :  { %329 = shalt.err (!%p326_p7)
}
  0x13   :  { %22 = dma.hbm_to_vmem [thread:$0]  %s503_s0, 128, %s20_s13, [#allocation3]  }
  0x14   :  { %s330_s28 = scalar_lea.hbm %s504_s1, 128 }
  0x15   :  { %p331_p8 = scmp.ne.s32.totalorder %s504_s1, %s330_s28  ;;  %p334_p9 = scmp.lt.u32.totalorder %s330_s28, %s504_s1 }
  0x17   :  { %p336_p10 = pnand %p334_p9, %p331_p8 }
  0x19   :  { %339 = shalt.err (!%p336_p10)
}
  0x1a   :  { %s340_s6 = scalar_lea.vmem %s30_s15, 128  ;;  %p345_p12 = scmp.lt.s32.totalorder %s30_s15, %s30_s15 }
  0x1b   :  { %p341_p11 = scmp.ne.s32.totalorder %s30_s15, %s340_s6  ;;  %p346_p13 = scmp.lt.s32.totalorder %s340_s6, %s340_s6 }
  0x1d   :  { %p347_p0 = por %p346_p13, %p345_p12 }
  0x1f   :  { %p348_p1 = pnand %p347_p0, %p341_p11 }
  0x21   :  { %351 = shalt.err (!%p348_p1)
}
  0x22   :  { %32 = dma.hbm_to_vmem [thread:$0]  %s504_s1, 128, %s30_s15, [#allocation6]  }
  0x23   :  { %396 = dma.done.wait [#allocation3], 128  }
  0x24   :  { %397 = vsyncadd [#allocation3], 4294967168 }
  0x25   :  { %398 = dma.done.wait [#allocation6], 128  }
  0x26   :  { %399 = vsyncadd [#allocation6], 4294967168  ;;  %v458_v0 = vld [vmem:[#allocation2] sm:$0xff]  ;;  %v406_v12 = vmov 683565275   ;;  %s412_s1 = smov [#allocation7]  }
  0x27   :  { %v44_v1 = vand.u32 2139095040, %v458_v0  ;;  %v41_v3 = vand.u32 2147483647, %v458_v0  ;;  %v407_v14 = vmov 2475754826   ;;  %vm43_vm7 = vcmp.lt.s32.totalorder %v458_v0, 0 }
  0x28   :  { %v408_v16 = vmov 2131351028   ;;  %v409_v18 = vmov 2102212464   ;;  %v410_v20 = vmov 920167782   ;;  %vm133_vm15 = vweird.f32 %v458_v0 }
  0x29   :  { %v45_v2 = vshrl.u32 %v44_v1, 23  ;;  %v48_v6 = vand.u32 8388607, %v41_v3  ;;  %v411_v27 = vmov 1326507024   ;;  %s258_s8 = sshll.u32 %s412_s1, 4  ;;  %s259_s8 = int_to_ptr.vmem [resolvable:$true] %s258_s8 }
  0x2a   :  { %vm42_vm8 = vcmp.le.f32.partialorder %v41_v3, 0.7853982  ;;  %s413_s9 = smov [#allocation8]   ;;  %s352_s11 = scalar_lea.vmem %s259_s8, 128 }
  0x2b   :  { %v282_v4 = vadd.s32 4294967169, %v45_v2  ;;  %v49_v9 = vor.u32 8388608, %v48_v6  ;;  %s268_s10 = sshll.u32 %s413_s9, 4  ;;  %p353_p2 = scmp.ne.s32.totalorder %s259_s8, %s352_s11  ;;  %s269_s10 = int_to_ptr.vmem [resolvable:$true] %s268_s10 }
  0x2c   :  { %p357_p3 = scmp.lt.s32.totalorder %s259_s8, %s259_s8  ;;  %p358_p4 = scmp.lt.s32.totalorder %s352_s11, %s352_s11 }
  0x2d   :  { %v51_v5 = vadd.s32 1, %v282_v4  ;;  %v89_v29 = vshll.u32 %v49_v9, 8 }
  0x2e   :  { %p359_p5 = por %p358_p4, %p357_p3 }
  0x2f   :  { %vm52_vm0 = vcmp.gt.s32.totalorder %v51_v5, 0 }
  0x30   :  { %v53_v7 = vsel %vm52_vm0, %v51_v5, 0  ;;  %p360_p6 = pnand %p359_p5, %p353_p2 }
  0x31   :  { %v55_v8 = vand.u32 31, %v53_v7  ;;  %v54_v10 = vshrl.u32 %v53_v7, 5 }
  0x33   :  { %v56_v11 = vsub.s32 32, %v55_v8  ;;  %v58_v13 = vshll.u32 %v406_v12, %v55_v8  ;;  %v61_v15 = vshll.u32 %v407_v14, %v55_v8  ;;  %v64_v17 = vshll.u32 %v408_v16, %v55_v8 }
  0x34   :  { %v67_v19 = vshll.u32 %v409_v18, %v55_v8  ;;  %v70_v21 = vshll.u32 %v410_v20, %v55_v8  ;;  %vm73_vm1 = vcmp.lt.s32.totalorder %v54_v10, 1  ;;  %vm76_vm2 = vcmp.lt.s32.totalorder %v54_v10, 4 }
  0x35   :  { %v57_v22 = vshrl.u32 %v406_v12, %v56_v11  ;;  %v59_v23 = vshrl.u32 %v407_v14, %v56_v11  ;;  %v62_v24 = vshrl.u32 %v408_v16, %v56_v11  ;;  %v65_v25 = vshrl.u32 %v409_v18, %v56_v11 }
  0x36   :  { %v68_v26 = vshrl.u32 %v410_v20, %v56_v11  ;;  %v71_v28 = vshrl.u32 %v411_v27, %v56_v11  ;;  %vm74_vm3 = vcmp.lt.s32.totalorder %v54_v10, 2  ;;  %vm75_vm4 = vcmp.lt.s32.totalorder %v54_v10, 3 }
  0x37   :  { %v60_v30 = vor.u32 %v59_v23, %v58_v13  ;;  %v63_v31 = vor.u32 %v62_v24, %v61_v15  ;;  %v66_v32 = vor.u32 %v65_v25, %v64_v17 }
  0x38   :  { %v69_v33 = vor.u32 %v68_v26, %v67_v19  ;;  %v72_v34 = vor.u32 %v71_v28, %v70_v21  ;;  %v40_v28 = vld [vmem:[#allocation5] sm:$0xff] }
  0x39   :  { %v77_v35 = vsel %vm73_vm1, %v57_v22, %v60_v30  ;;  %v78_v36 = vsel %vm76_vm2, %v66_v32, 2102212464  ;;  %v81_v37 = vsel %vm73_vm1, %v60_v30, %v63_v31  ;;  %v85_v38 = vsel %vm73_vm1, %v63_v31, %v66_v32 }
  0x3a   :  { %v79_v39 = vsel %vm75_vm4, %v63_v31, %v78_v36  ;;  %v82_v40 = vsel %vm76_vm2, %v69_v33, 920167782  ;;  %v86_v41 = vsel %vm76_vm2, %v72_v34, 1326507024 }
  0x3b   :  { %v83_v42 = vsel %vm75_vm4, %v66_v32, %v82_v40  ;;  %v87_v43 = vsel %vm75_vm4, %v69_v33, %v86_v41  ;;  %v80_v44 = vsel %vm74_vm3, %v77_v35, %v79_v39 }
  0x3c   :  { %v84_v45 = vsel %vm74_vm3, %v81_v37, %v83_v42  ;;  %v88_v46 = vsel %vm74_vm3, %v85_v38, %v87_v43  ;;  %v96_v51 = vmul.u32 %v89_v29, %v80_v44 }
  0x3d   :  { %v464_v47 = vmul.u32.u64.low %v89_v29, %v88_v46  ;;  %v465_v48 = vmul.u32.u64.high %v89_v29, %v88_v46, %v464_v47  ;;  %v467_v49 = vmul.u32.u64.low %v89_v29, %v84_v45  ;;  %v468_v50 = vmul.u32.u64.high %v89_v29, %v84_v45, %v467_v49 }
  0x3f   :  { %vm98_vm5 = vc.u32 %v465_v48, %v467_v49  ;;  %v99_v52 = vadd.s32 1, %v468_v50  ;;  %v97_v63 = vadd.s32 %v467_v49, %v465_v48 }
  0x41   :  { %v100_v53 = vsel %vm98_vm5, %v99_v52, %v468_v50 }
  0x42   :  { %v101_v54 = vadd.s32 %v100_v53, %v96_v51 }
  0x44   :  { %v102_v55 = vadd.s32 536870912, %v101_v54 }
  0x46   :  { %v103_v56 = vshrl.u32 %v102_v55, 30 }
  0x48   :  { %v104_v57 = vshll.u32 %v103_v56, 30  ;;  %v127_v13 = vsub.s32 4, %v103_v56 }
  0x4a   :  { %v105_v58 = vsub.s32 %v101_v54, %v104_v57  ;;  %v128_v16 = vsel %vm43_vm7, %v127_v13, %v103_v56 }
  0x4b   :  { %v130_v19 = vsel %vm42_vm8, 0, %v128_v16 }
  0x4c   :  { %v107_v59 = vsub.s32 0, %v105_v58  ;;  %v239_v20 = vadd.s32 3, %v130_v19  ;;  %v134_v21 = vand.u32 3, %v130_v19 }
  0x4e   :  { %v283_v60 = vmin.u32 %v107_v59, %v105_v58  ;;  %v240_v22 = vand.u32 3, %v239_v20  ;;  %vm139_vm9 = vcmp.eq.s32.totalorder %v134_v21, 2  ;;  %vm136_vm11 = vcmp.eq.s32.totalorder %v134_v21, 0 }
  0x4f   :  { %vm135_vm13 = vcmp.lt.s32.totalorder %v134_v21, 2 }
  0x50   :  { %v109_v61 = vclz %v283_v60  ;;  %vm245_vm10 = vcmp.eq.s32.totalorder %v240_v22, 2  ;;  %vm242_vm12 = vcmp.eq.s32.totalorder %v240_v22, 0  ;;  %vm241_vm14 = vcmp.lt.s32.totalorder %v240_v22, 2 }
  0x52   :  { %v284_v62 = vadd.s32 4294967294, %v109_v61 }
  0x54   :  { %vm285_vm6 = vcmp.lt.s32.totalorder %v284_v62, 0 }
  0x55   :  { %v112_v1 = vsel %vm285_vm6, 0, %v284_v62 }
  0x56   :  { %v113_v2 = vsub.s32 32, %v112_v1  ;;  %v114_v4 = vshll.u32 %v105_v58, %v112_v1  ;;  %v117_v5 = vsub.s32 4294967266, %v112_v1 }
  0x58   :  { %v115_v6 = vshrl.u32 %v97_v63, %v113_v2  ;;  %v118_v7 = vadd.s32 127, %v117_v5 }
  0x5a   :  { %v116_v8 = vor.u32 %v115_v6, %v114_v4  ;;  %v119_v9 = vshll.u32 %v118_v7, 23 }
  0x5c   :  { %v120_v10 = vor.u32 4788187, %v119_v9  ;;  %v123_v11 = vcvt.s32.f32 %v116_v8 }
  0x5e   :  { %v121_v12 = vand.u32 2147483647, %v120_v10 }
  0x60   :  { %v124_v14 = vmul.f32 %v123_v11, %v121_v12 }
  0x62   :  { %v125_v15 = vxor.u32 2147483648, %v124_v14 }
  0x64   :  { %v126_v17 = vsel %vm43_vm7, %v125_v15, %v124_v14 }
  0x65   :  { %v129_v18 = vsel %vm42_vm8, %v458_v0, %v126_v17 }
  0x66   :  { %304 = vcosq.f32 %v129_v18 }
  0x67   :  { %306 = vsinq.f32 %v129_v18 }
  0x70   :  { %v305_v23 = vpop.eup %304 }
  0x71   :  { %v307_v24 = vpop.eup %306  ;;  %v140_v25 = vxor.u32 2147483648, %v305_v23 }
  0x72   :  { %v137_v3 = vxor.u32 2147483648, %v307_v24 }
  0x73   :  { %v141_v26 = vsel %vm139_vm9, %v140_v25, %v307_v24  ;;  %v247_v27 = vsel %vm245_vm10, %v140_v25, %v307_v24 }
  0x74   :  { %v138_v29 = vsel %vm136_vm11, %v305_v23, %v137_v3  ;;  %v244_v30 = vsel %vm242_vm12, %v305_v23, %v137_v3 }
  0x75   :  { %v142_v31 = vsel %vm135_vm13, %v138_v29, %v141_v26  ;;  %v248_v32 = vsel %vm241_vm14, %v244_v30, %v247_v27 }
  0x76   :  { %v143_v33 = vsel %vm133_vm15, nan, %v142_v31  ;;  %v249_v34 = vsel %vm133_vm15, nan, %v248_v32 }
  0x77   :  { %v144_v35 = vmul.f32 %v143_v33, %v40_v28  ;;  %v250_v36 = vmul.f32 %v249_v34, %v40_v28 }
  0x79   :  { %145 = vst [vmem:[#allocation7] sm:$0xff] %v144_v35  ;;  %251 = vst [vmem:[#allocation8] sm:$0xff] %v250_v36 }
  0x7a   :  { %363 = shalt.err (!%p360_p6)
}
  0x7b   :  { %s364_s14 = scalar_lea.hbm %s505_s2, 128 }
  0x7c   :  { %p365_p7 = scmp.ne.s32.totalorder %s505_s2, %s364_s14  ;;  %p368_p8 = scmp.lt.u32.totalorder %s364_s14, %s505_s2 }
  0x7e   :  { %p370_p9 = pnand %p368_p8, %p365_p7 }
  0x80   :  { %373 = shalt.err (!%p370_p9)
}
  0x81   :  { %261 = dma.vmem_to_hbm [thread:$0]  %s259_s8, 128, %s505_s2, [#allocation4]  }
  0x82   :  { %s374_s21 = scalar_lea.vmem %s269_s10, 128  ;;  %p379_p11 = scmp.lt.s32.totalorder %s269_s10, %s269_s10 }
  0x83   :  { %p375_p10 = scmp.ne.s32.totalorder %s269_s10, %s374_s21  ;;  %p380_p12 = scmp.lt.s32.totalorder %s374_s21, %s374_s21 }
  0x85   :  { %p381_p13 = por %p380_p12, %p379_p11 }
  0x87   :  { %p382_p0 = pnand %p381_p13, %p375_p10 }
  0x89   :  { %385 = shalt.err (!%p382_p0)
}
  0x8a   :  { %s386_s24 = scalar_lea.hbm %s506_s3, 128 }
  0x8b   :  { %p387_p1 = scmp.ne.s32.totalorder %s506_s3, %s386_s24  ;;  %p390_p2 = scmp.lt.u32.totalorder %s386_s24, %s506_s3 }
  0x8d   :  { %p392_p3 = pnand %p390_p2, %p387_p1 }
  0x8f   :  { %395 = shalt.err (!%p392_p3)
}
  0x90   :  { %271 = dma.vmem_to_hbm [thread:$0]  %s269_s10, 128, %s506_s3, [#allocation9]  }
  0x91   :  { %400 = dma.done.wait [#allocation4], 128  }
  0x92   :  { %401 = vsyncadd [#allocation4], 4294967168 }
  0x93   :  { %402 = dma.done.wait [#allocation9], 128  }
  0x94   :  { %403 = vsyncadd [#allocation9], 4294967168 }
  0x95   :  { %278 = vsyncpa [#allocation3], 1 }
  0x96   :  { %279 = vsyncpa [#allocation6], 1 }
  0x97   :  { %280 = vsyncpa [#allocation4], 1 }
  0x98   :  { %281 = vsyncpa [#allocation9], 1 }

</bundles_post_ra>
